<compile_context>
chip_gen: v6e
topology: v6e:2x2x1
jax: 0.10.0
libtpu: 0.0.40
codegen_flags: <defaults>
</compile_context>

<pallas_src>
import functools

import jax
import jax.numpy as jnp
import numpy as np
from jax.experimental import pallas as pl
from jax.experimental.pallas import tpu as pltpu


# ---------------------------------------------------------------------------
# Hardware-aware sizing helpers.
# ---------------------------------------------------------------------------
def _vmem_capacity_bytes():
    """(physical VMEM per TensorCore, detected?) -- conservative fallback."""
    try:
        info = pltpu.get_tpu_info()
        for name in ("vmem_capacity_bytes", "vmem_bytes", "vmem_size_bytes"):
            v = getattr(info, name, None)
            if v:
                return int(v), True
    except Exception:
        pass
    return 64 << 20, False  # v7x per-TC size; safe lower bound everywhere


def _sublane_multiple(*dtypes):
    """Sublane packing multiple: 8 (f32), 16 (bf16/f16), 32 (int8/fp8)."""
    m = 8
    for dt in dtypes:
        item = jnp.dtype(dt).itemsize
        m = max(m, 8 * max(1, 4 // item))
    return m


def _pick_bh_tile(bh, lane, itemsize, sublane_mult, target_bytes,
                  prefer_multi=False):
    """Largest BH tile that (a) divides BH, (b) is a multiple of the sublane
    packing factor (or == BH), (c) keeps one xs tile under target_bytes, and
    (d) if prefer_multi, leaves >= 2 tiles when possible (v7x megacore)."""
    if bh <= sublane_mult:
        return bh
    cands = [t for t in range(sublane_mult, bh + 1, sublane_mult) if bh % t == 0]
    if not cands:
        return bh
    fitting = [t for t in cands if t * lane * itemsize <= target_bytes] or [min(cands)]
    if prefer_multi:
        multi = [t for t in fitting if bh // t >= 2]
        if multi:
            return max(multi)
    return max(fitting)


# ---------------------------------------------------------------------------
# Stage 1: squeeze (AdaptiveAvgPool2d -> Flatten -> LayerScaler), concat,
#          per-head attention logits over depth, softmax over depth.
# ---------------------------------------------------------------------------
def _squeeze_softmax_kernel(x_last_ref, all_sq_ref, gamma_ref,
                            all_sq_out_ref, attn_out_ref,
                            *, temperature, query_idx):
    # x_last_ref     : (bh1, hd, HW)
    # all_sq_ref     : (D-1, bh1, hd)
    # gamma_ref      : (bh1, hd)   float32
    # all_sq_out_ref : (D, bh1, hd)
    # attn_out_ref   : (D, bh1, 1) float32
    D = all_sq_out_ref.shape[0]

    # AdaptiveAvgPool2d((1,1)) + Flatten + LayerScaler(gamma)
    squeezed = (jnp.mean(x_last_ref[...].astype(jnp.float32), axis=-1)
                * gamma_ref[...])                                          # (bh1, hd)

    # torch.cat([all_squeezed, squeezed.unsqueeze(0)])
    keys = jnp.concatenate(
        [all_sq_ref[...].astype(jnp.float32), squeezed[None]], axis=0)     # (D, bh1, hd)
    all_sq_out_ref[...] = keys.astype(all_sq_out_ref.dtype)

    # einsum('b e h, d b e h -> d b e') / T, softmax over depth d.
    qi = query_idx % D                                                     # static
    query = keys[qi]                                                       # (bh1, hd)
    logits = jnp.sum(query[None, :, :] * keys, axis=-1, keepdims=True)     # (D, bh1, 1)
    logits = logits * (1.0 / temperature)
    m = jnp.max(logits, axis=0, keepdims=True)
    e = jnp.exp(logits - m)
    denom = jnp.sum(e, axis=0, keepdims=True)
    # exact reciprocal to keep 1e-5 accuracy
    attn_out_ref[...] = (e * pl.reciprocal(denom, approx=False)).astype(
        attn_out_ref.dtype)


# ---------------------------------------------------------------------------
# Stage 2: x_new[bh, :] = sum_d attn[d, bh] * xs[d, bh, :]
# Grid: (BH tiles [parallel], D [arbitrary]).
# ---------------------------------------------------------------------------
def _weighted_sum_kernel_f32(attn_ref, xs_ref, o_ref):
    # attn_ref : (D, BH_TILE, 1)  f32  (fetched once per BH tile)
    # xs_ref   : (1, BH_TILE, L)  f32
    # o_ref    : (BH_TILE, L)     f32  (resident across d -> accumulate here)
    d = pl.program_id(1)
    contrib = xs_ref[0] * attn_ref[d]          # broadcast over fused hd*HW

    @pl.when(d == 0)
    def _():
        o_ref[...] = contrib

    @pl.when(d > 0)
    def _():
        o_ref[...] += contrib


def _weighted_sum_kernel_acc(attn_ref, xs_ref, o_ref, acc_ref):
    # attn_ref : (D, BH_TILE, 1)  f32
    # xs_ref   : (1, BH_TILE, L)  (bf16/fp8/...)
    # o_ref    : (BH_TILE, L)
    # acc_ref  : (BH_TILE, L)     f32 scratch
    d = pl.program_id(1)
    contrib = xs_ref[0].astype(jnp.float32) * attn_ref[d]

    @pl.when(d == 0)
    def _():
        acc_ref[...] = contrib

    @pl.when(d > 0)
    def _():
        acc_ref[...] += contrib

    @pl.when(d == pl.num_programs(1) - 1)
    def _():
        o_ref[...] = acc_ref[...].astype(o_ref.dtype)


def attn_layer(xs, all_squeezed, gamma, *, num_heads, query_idx=-1, temperature=1.0):
    D, B, C, H, W = xs.shape
    assert C % num_heads == 0
    hd = C // num_heads
    BH = B * num_heads
    HW = H * W
    L = hd * HW                      # lane-dense fused last dim
    Dp = all_squeezed.shape[0]
    assert Dp == D - 1
    # TODO(synk): Dp == 0 (first layer, empty all_squeezed) needs a concat-free
    # Stage-1 variant; not implemented here.
    assert Dp >= 1

    vmem_cap, vmem_detected = _vmem_capacity_bytes()
    vmem_budget = (vmem_cap * 3) // 4              # headroom for Mosaic scratch
    target_bytes = max(1 << 20, vmem_cap // 16)    # ~4 MiB v7x, ~8 MiB v5e/v6e
    is_v7x_like = vmem_detected and vmem_cap <= (64 << 20)

    xs_it = jnp.dtype(xs.dtype).itemsize
    sq_it = jnp.dtype(all_squeezed.dtype).itemsize

    x_last = xs[D - 1].reshape(BH, hd, HW)
    sq_r = all_squeezed.reshape(Dp, BH, hd)
    gamma_r = jnp.broadcast_to(
        gamma.reshape(1, num_heads, hd), (B, num_heads, hd)).reshape(BH, hd)
    gamma_r = gamma_r.astype(jnp.float32)

    # ---- Stage 1: squeeze + depth softmax (BH-tiled, explicit VMEM limit) ----
    sub1 = _sublane_multiple(xs.dtype, all_squeezed.dtype)
    bh1 = _pick_bh_tile(BH, L, xs_it, sub1, target_bytes)
    n1 = BH // bh1
    sq_needed = (2 * bh1 * hd * HW * xs_it
                 + 2 * Dp * bh1 * hd * sq_it
                 + 2 * bh1 * hd * 4
                 + 2 * D * bh1 * hd * sq_it
                 + 2 * D * bh1 * 4
                 + (2 << 20))
    sq_vmem = int(min(max(sq_needed, 16 << 20), vmem_budget))

    sq_kernel = functools.partial(
        _squeeze_softmax_kernel, temperature=temperature, query_idx=query_idx)
    all_sq_new, attn = pl.pallas_call(
        sq_kernel,
        out_shape=(jax.ShapeDtypeStruct((D, BH, hd), all_squeezed.dtype),
                   jax.ShapeDtypeStruct((D, BH, 1), jnp.float32)),
        grid=(n1,),
        in_specs=[
            pl.BlockSpec((bh1, hd, HW), lambda i: (i, 0, 0)),
            pl.BlockSpec((Dp, bh1, hd), lambda i: (0, i, 0)),
            pl.BlockSpec((bh1, hd), lambda i: (i, 0)),
        ],
        out_specs=(
            pl.BlockSpec((D, bh1, hd), lambda i: (0, i, 0)),
            pl.BlockSpec((D, bh1, 1), lambda i: (0, i, 0)),
        ),
        compiler_params=pltpu.CompilerParams(
            dimension_semantics=("parallel",),
            vmem_limit_bytes=sq_vmem),
    )(x_last, sq_r, gamma_r)

    # ---- Stage 2: streamed depth-weighted sum ----
    xs_r = xs.reshape(D, BH, L)
    sub2 = _sublane_multiple(xs.dtype)
    bh_tile = _pick_bh_tile(BH, L, xs_it, sub2, target_bytes,
                            prefer_multi=is_v7x_like)
    n_bh_tiles = BH // bh_tile

    f32_io = jnp.dtype(xs.dtype) == jnp.dtype(jnp.float32)

    # Deeper xs buffering only on small-VMEM / high-bandwidth (v7x-like) chips.
    xs_buffers = 3 if is_v7x_like else 2

    xs_tile_b = bh_tile * L * xs_it
    out_buffers = 2 if f32_io else 1
    needed = (xs_buffers * xs_tile_b
              + out_buffers * bh_tile * L * xs_it
              + (0 if f32_io else bh_tile * L * 4)
              + 2 * D * bh_tile * 4
              + (2 << 20))
    vmem_limit = int(min(max(needed, 32 << 20), vmem_budget))

    xs_spec_kwargs = {}
    if xs_buffers != 2:
        xs_spec_kwargs["pipeline_mode"] = pl.Buffered(xs_buffers)

    in_specs = [
        # attn block index is invariant across d -> fetched once per BH tile.
        pl.BlockSpec((D, bh_tile, 1), lambda i, d: (0, i, 0)),
        pl.BlockSpec((1, bh_tile, L), lambda i, d: (d, i, 0), **xs_spec_kwargs),
    ]

    if f32_io:
        # Accumulate directly into the resident output block; no scratch.
        kernel = _weighted_sum_kernel_f32
        scratch_shapes = []
        out_spec = pl.BlockSpec((bh_tile, L), lambda i, d: (i, 0))
    else:
        # f32 scratch accumulator; output written once at d==D-1 -> single buffer.
        kernel = _weighted_sum_kernel_acc
        scratch_shapes = [pltpu.VMEM((bh_tile, L), jnp.float32)]
        out_spec = pl.BlockSpec((bh_tile, L), lambda i, d: (i, 0),
                                pipeline_mode=pl.Buffered(1))

    x_new = pl.pallas_call(
        kernel,
        out_shape=jax.ShapeDtypeStruct((BH, L), xs.dtype),
        grid=(n_bh_tiles, D),
        in_specs=in_specs,
        out_specs=out_spec,
        scratch_shapes=scratch_shapes,
        compiler_params=pltpu.CompilerParams(
            dimension_semantics=("parallel", "arbitrary"),
            vmem_limit_bytes=vmem_limit),
    )(attn, xs_r)

    return x_new.reshape(B, C, H, W), all_sq_new.reshape(D, B, C)


# ---------------------------------------------------------------------------
# Pure-JAX reference for correctness.
# ---------------------------------------------------------------------------
def _reference(xs, all_squeezed, gamma, num_heads, query_idx, temperature):
    D, B, C, H, W = xs.shape
    hd = C // num_heads
    squeezed = jnp.mean(xs[-1], axis=(2, 3)) * gamma                       # (B, C)
    all_sq = jnp.concatenate([all_squeezed, squeezed[None]], axis=0)       # (D, B, C)
    q = all_sq[query_idx].reshape(B, num_heads, hd)
    k = all_sq.reshape(D, B, num_heads, hd)
    logits = jnp.einsum('beh,dbeh->dbe', q, k) / temperature
    attn = jax.nn.softmax(logits, axis=0)
    xs_r = xs.reshape(D, B, num_heads, hd, H, W)
    x_new = jnp.einsum('dbehvw,dbe->behvw', xs_r, attn).reshape(B, C, H, W)
    return x_new, all_sq


if __name__ == "__main__":
    # Small, module-consistent shapes.
    D, B, C, H, W = 3, 2, 32, 8, 8
    num_heads = 4
    temperature = 1.0
    query_idx = -1
    init_scale = 1.0

    key = jax.random.PRNGKey(0)
    k1, k2 = jax.random.split(key)
    xs = jax.random.normal(k1, (D, B, C, H, W), jnp.float32)
    all_squeezed = jax.random.normal(k2, (D - 1, B, C), jnp.float32)
    # LayerScaler parameter: deterministic init = init_scale * ones(hidden_dim)
    gamma = init_scale * jnp.ones((C,), jnp.float32)

    x_new, all_sq_new = attn_layer(
        xs, all_squeezed, gamma,
        num_heads=num_heads, query_idx=query_idx, temperature=temperature)
    jax.block_until_ready((x_new, all_sq_new))

    ref_x, ref_sq = _reference(xs, all_squeezed, gamma, num_heads, query_idx, temperature)
    np.testing.assert_allclose(np.asarray(x_new), np.asarray(ref_x), rtol=1e-5, atol=1e-5)
    np.testing.assert_allclose(np.asarray(all_sq_new), np.asarray(ref_sq), rtol=1e-5, atol=1e-5)

    print("KERNEL_OK")
</pallas_src>

<mosaic_0001>
module attributes {stable_mosaic.version = 11 : i64} {
  func.func @_squeeze_softmax_kernel(%arg0: i32, %arg1: memref<8x8x64xf32, #tpu.memory_space<vmem>>, %arg2: memref<2x8x8xf32, #tpu.memory_space<vmem>>, %arg3: memref<8x8xf32, #tpu.memory_space<vmem>>, %arg4: memref<3x8x8xf32, #tpu.memory_space<vmem>>, %arg5: memref<3x8x1xf32, #tpu.memory_space<vmem>>) attributes {dimension_semantics = [#tpu.dimension_semantics<parallel>], iteration_bounds = array<i64: 1>, scalar_prefetch = 0 : i64, scratch_operands = 0 : i64, tpu.core_type = #tpu.core_type<tc>, window_params = [{transform_indices = @transform_0, window_bounds = array<i64: 8, 8, 64>}, {transform_indices = @transform_1, window_bounds = array<i64: 2, 8, 8>}, {transform_indices = @transform_2, window_bounds = array<i64: 8, 8>}, {transform_indices = @transform_3, window_bounds = array<i64: 3, 8, 8>}, {transform_indices = @transform_4, window_bounds = array<i64: 3, 8, 1>}]} {
    %c0 = arith.constant 0 : index
    %c0_0 = arith.constant 0 : index
    %c0_1 = arith.constant 0 : index
    %0 = vector.load %arg1[%c0, %c0_0, %c0_1] : memref<8x8x64xf32, #tpu.memory_space<vmem>>, vector<8x8x64xf32>
    %cst = arith.constant dense<0.000000e+00> : vector<8x8xf32>
    %1 = vector.multi_reduction <add>, %0, %cst [2] : vector<8x8x64xf32> to vector<8x8xf32>
    %cst_2 = arith.constant 6.400000e+01 : f32
    %2 = vector.broadcast %cst_2 : f32 to vector<8x8xf32>
    %3 = arith.divf %1, %2 : vector<8x8xf32>
    %c0_3 = arith.constant 0 : index
    %c0_4 = arith.constant 0 : index
    %4 = vector.load %arg3[%c0_3, %c0_4] : memref<8x8xf32, #tpu.memory_space<vmem>>, vector<8x8xf32>
    %5 = arith.mulf %3, %4 : vector<8x8xf32>
    %c0_5 = arith.constant 0 : index
    %c0_6 = arith.constant 0 : index
    %c0_7 = arith.constant 0 : index
    %6 = vector.load %arg2[%c0_5, %c0_6, %c0_7] : memref<2x8x8xf32, #tpu.memory_space<vmem>>, vector<2x8x8xf32>
    %7 = vector.shape_cast %5 : vector<8x8xf32> to vector<1x8x8xf32>
    %8 = tpu.concatenate %6, %7 in 0 : vector<2x8x8xf32>, vector<1x8x8xf32> -> vector<3x8x8xf32>
    %c0_8 = arith.constant 0 : index
    %c0_9 = arith.constant 0 : index
    %c0_10 = arith.constant 0 : index
    %9 = vector.load %arg4[%c0_8, %c0_9, %c0_10] : memref<3x8x8xf32, #tpu.memory_space<vmem>>, vector<3x8x8xf32>
    tpu.vector_store %arg4[%c0_8, %c0_9, %c0_10], %8 {strides = array<i32>} : memref<3x8x8xf32, #tpu.memory_space<vmem>>, vector<3x8x8xf32>,
    %10 = vector.extract_strided_slice %8 {offsets = [2, 0, 0], sizes = [1, 8, 8], strides = [1, 1, 1]} : vector<3x8x8xf32> to vector<1x8x8xf32>
    %11 = vector.shape_cast %10 : vector<1x8x8xf32> to vector<8x8xf32>
    %12 = vector.shape_cast %11 : vector<8x8xf32> to vector<1x8x8xf32>
    %13 = vector.broadcast %12 : vector<1x8x8xf32> to vector<3x8x8xf32>
    %14 = arith.mulf %13, %8 : vector<3x8x8xf32>
    %cst_11 = arith.constant dense<0.000000e+00> : vector<3x8xf32>
    %15 = vector.multi_reduction <add>, %14, %cst_11 [2] : vector<3x8x8xf32> to vector<3x8xf32>
    %16 = vector.shape_cast %15 : vector<3x8xf32> to vector<3x8x1xf32>
    %cst_12 = arith.constant 1.000000e+00 : f32
    %17 = vector.broadcast %cst_12 : f32 to vector<3x8x1xf32>
    %18 = arith.mulf %16, %17 : vector<3x8x1xf32>
    %cst_13 = arith.constant dense<0xFF800000> : vector<8x1xf32>
    %19 = vector.multi_reduction <maximumf>, %18, %cst_13 [0] : vector<3x8x1xf32> to vector<8x1xf32>
    %20 = vector.shape_cast %19 : vector<8x1xf32> to vector<1x8x1xf32>
    %21 = vector.broadcast %20 : vector<1x8x1xf32> to vector<3x8x1xf32>
    %22 = arith.subf %18, %21 : vector<3x8x1xf32>
    %23 = math.exp %22 : vector<3x8x1xf32>
    %cst_14 = arith.constant dense<0.000000e+00> : vector<8x1xf32>
    %24 = vector.multi_reduction <add>, %23, %cst_14 [0] : vector<3x8x1xf32> to vector<8x1xf32>
    %25 = vector.shape_cast %24 : vector<8x1xf32> to vector<1x8x1xf32>
    %26 = tpu.reciprocal %25 : vector<1x8x1xf32> -> vector<1x8x1xf32>
    %27 = vector.broadcast %26 : vector<1x8x1xf32> to vector<3x8x1xf32>
    %28 = arith.mulf %23, %27 : vector<3x8x1xf32>
    %c0_15 = arith.constant 0 : index
    %c0_16 = arith.constant 0 : index
    %c0_17 = arith.constant 0 : index
    %29 = vector.load %arg5[%c0_15, %c0_16, %c0_17] : memref<3x8x1xf32, #tpu.memory_space<vmem>>, vector<3x8x1xf32>
    tpu.vector_store %arg5[%c0_15, %c0_16, %c0_17], %28 {strides = array<i32>} : memref<3x8x1xf32, #tpu.memory_space<vmem>>, vector<3x8x1xf32>,
    return
  }
  func.func @transform_0(%arg0: i32) -> (i32, i32, i32) {
    %c0_i32 = arith.constant 0 : i32
    %c0_i32_0 = arith.constant 0 : i32
    %c0_i32_1 = arith.constant 0 : i32
    return %arg0, %c0_i32, %c0_i32_0 : i32, i32, i32
  }
  func.func @transform_1(%arg0: i32) -> (i32, i32, i32) {
    %c0_i32 = arith.constant 0 : i32
    %c0_i32_0 = arith.constant 0 : i32
    %c0_i32_1 = arith.constant 0 : i32
    return %c0_i32, %arg0, %c0_i32_0 : i32, i32, i32
  }
  func.func @transform_2(%arg0: i32) -> (i32, i32) {
    %c0_i32 = arith.constant 0 : i32
    %c0_i32_0 = arith.constant 0 : i32
    return %arg0, %c0_i32 : i32, i32
  }
  func.func @transform_3(%arg0: i32) -> (i32, i32, i32) {
    %c0_i32 = arith.constant 0 : i32
    %c0_i32_0 = arith.constant 0 : i32
    %c0_i32_1 = arith.constant 0 : i32
    return %c0_i32, %arg0, %c0_i32_0 : i32, i32, i32
  }
  func.func @transform_4(%arg0: i32) -> (i32, i32, i32) {
    %c0_i32 = arith.constant 0 : i32
    %c0_i32_0 = arith.constant 0 : i32
    %c0_i32_1 = arith.constant 0 : i32
    return %c0_i32, %arg0, %c0_i32_0 : i32, i32, i32
  }
}

</mosaic_0001>

<bundles_post_ra>
// kernel: tpu_custom_call.1
= control target key start
LH: loop header
LB: loop body
LE: loop exit
PB: predicated region body
PF: predicated region fallthrough
CT: control target
= control target key end

     0   :  { %10 = vsyncpa [#allocation3], 0  ;;  %s503_s0 = inlined_call_operand.hbm [shape: f32[8,8,64], index: 0, kind: input, shape index: {}]   ;;  %s504_s1 = inlined_call_operand.hbm [shape: f32[2,8,8], index: 1, kind: input, shape index: {}]   ;;  %s505_s2 = inlined_call_operand.hbm [shape: f32[8,8], index: 2, kind: input, shape index: {}]   ;;  %s506_s3 = inlined_call_operand.hbm [shape: f32[3,8,8], index: 3, kind: output, shape index: {0}]   ;;  %s507_s4 = inlined_call_operand.vmem [shape: f32[3,8,1], index: 4, kind: output, shape index: {1}]  }
   0x1   :  { %11 = vsyncpa [#allocation6], 0 }
   0x2   :  { %12 = vsyncpa [#allocation4], 0  ;;  %s417_s15 = smov [#allocation5]   ;;  %s418_s17 = smov [#allocation2]  }
   0x3   :  { %s30_s16 = sshll.u32 %s417_s15, 4  ;;  %s18_s18 = sshll.u32 %s418_s17, 4  ;;  %s31_s16 = int_to_ptr.vmem [resolvable:$true] %s30_s16  ;;  %s19_s18 = int_to_ptr.vmem [resolvable:$true] %s18_s18 }
   0x4   :  { %s339_s19 = scalar_lea.vmem %s31_s16, 256  ;;  %p344_p1 = scmp.lt.s32.totalorder %s31_s16, %s31_s16 }
   0x5   :  { %p340_p0 = scmp.ne.s32.totalorder %s31_s16, %s339_s19  ;;  %p345_p2 = scmp.lt.s32.totalorder %s339_s19, %s339_s19 }
   0x7   :  { %p346_p3 = por %p345_p2, %p344_p1 }
   0x9   :  { %p347_p4 = pnand %p346_p3, %p340_p0 }
   0xb   :  { %350 = shalt.err (!%p347_p4)
}
   0xc   :  { %s419_s20 = smov 128   ;;  %s420_s21 = smov 8  }
   0xd   :  { %36 = dma.hbm_to_vmem [thread:$0]  %s504_s1, 256, %s31_s16, [#allocation6], %s419_s20, %s419_s20, %s420_s21  }
   0xe   :  { %s359_s24 = scalar_lea.vmem %s19_s18, 1024  ;;  %p364_p6 = scmp.lt.s32.totalorder %s19_s18, %s19_s18 }
   0xf   :  { %p360_p5 = scmp.ne.s32.totalorder %s19_s18, %s359_s24  ;;  %p365_p7 = scmp.lt.s32.totalorder %s359_s24, %s359_s24 }
  0x11   :  { %p366_p8 = por %p365_p7, %p364_p6 }
  0x13   :  { %p367_p9 = pnand %p366_p8, %p360_p5 }
  0x15   :  { %370 = shalt.err (!%p367_p9)
}
  0x16   :  { %24 = dma.hbm_to_vmem [thread:$0]  %s503_s0, 1024, %s19_s18, [#allocation3], %s419_s20, %s419_s20, %s420_s21  }
  0x17   :  { %s421_s27 = smov [#allocation7]  }
  0x18   :  { %s43_s28 = sshll.u32 %s421_s27, 4  ;;  %s44_s28 = int_to_ptr.vmem [resolvable:$true] %s43_s28 }
  0x19   :  { %s379_s29 = scalar_lea.vmem %s44_s28, 128  ;;  %p384_p11 = scmp.lt.s32.totalorder %s44_s28, %s44_s28 }
  0x1a   :  { %p380_p10 = scmp.ne.s32.totalorder %s44_s28, %s379_s29  ;;  %p385_p12 = scmp.lt.s32.totalorder %s379_s29, %s379_s29 }
  0x1c   :  { %p386_p13 = por %p385_p12, %p384_p11 }
  0x1e   :  { %p387_p0 = pnand %p386_p13, %p380_p10 }
  0x20   :  { %390 = shalt.err (!%p387_p0)
}
  0x21   :  { %46 = dma.hbm_to_vmem [thread:$0]  %s505_s2, 128, %s44_s28, [#allocation6]  }
  0x22   :  { %411 = dma.done.wait [#allocation3], 1024  }
  0x23   :  { %412 = vsyncadd [#allocation3], 4294966272 }
  0x24   :  { %413 = dma.done.wait [#allocation6], 384  }
  0x25   :  { %414 = vsyncadd [#allocation6], 4294966912  ;;  %vm64_vm0 = vcmask 523264   ;;  %v58_v0 = vld [vmem:[#allocation2 + $0x10] sm:$0xff]  ;;  %v56_v1 = vld [vmem:[#allocation2] sm:$0xff]  ;;  %v100_v16 = vlaneseq  ;;  %v422_v23 = vmov 0  }
  0x26   :  { %v59_v2 = vld [vmem:[#allocation2 + $0x18] sm:$0xff]  ;;  %v71_v3 = vsel %vm64_vm0, %v58_v0, 0.0  ;;  %v65_v4 = vsel %vm64_vm0, %v56_v1, 0.0  ;;  %v57_v5 = vld [vmem:[#allocation2 + $0x8] sm:$0xff]  ;;  %v60_v9 = vld [vmem:[#allocation2 + $0x20] sm:$0xff]  ;;  %322 = vset.pattern.permute.xlu1 %v422_v23  ;;  %321 = vset.pattern.permute.xlu0 %v422_v23  ;;  %vm255_vm1 = vcmask 64512  }
  0x27   :  { %72 = vadd.xlane.f32.xlu1 %v71_v3  ;;  %66 = vadd.xlane.f32.xlu0 %v65_v4  ;;  %v74_v6 = vsel %vm64_vm0, %v59_v2, 0.0  ;;  %v68_v7 = vsel %vm64_vm0, %v57_v5, 0.0  ;;  %v61_v8 = vld [vmem:[#allocation2 + $0x28] sm:$0xff]  ;;  %v77_v11 = vsel %vm64_vm0, %v60_v9, 0.0  ;;  %v63_v12 = vld [vmem:[#allocation2 + $0x38] sm:$0xff]  ;;  %v62_v13 = vld [vmem:[#allocation2 + $0x30] sm:$0xff] }
  0x28   :  { %v80_v10 = vsel %vm64_vm0, %v61_v8, 0.0  ;;  %v86_v14 = vsel %vm64_vm0, %v63_v12, 0.0  ;;  %v83_v15 = vsel %vm64_vm0, %v62_v13, 0.0  ;;  %v101_v17 = vshrl.u32 %v100_v16, 7  ;;  %v98_v19 = vld [vmem:[#allocation7] sm:$0xff]  ;;  %s423_s0 = smov [#allocation8]  }
  0x29   :  { %v207_v36 = vand.u32 127, %v100_v16  ;;  %vm240_vm2 = vcmask 1041409   ;;  %vm242_vm3 = vcmask 1042434   ;;  %vm244_vm4 = vcmask 1043459   ;;  %s297_s2 = sshll.u32 %s423_s0, 4  ;;  %s298_s2 = int_to_ptr.vmem [resolvable:$true] %s297_s2 }
  0x2a   :  { %v109_v18 = vsub.s32 1, %v101_v17  ;;  %v116_v21 = vsub.s32 2, %v101_v17  ;;  %v102_v22 = vsub.s32 0, %v101_v17  ;;  %v123_v25 = vsub.s32 3, %v101_v17  ;;  %s391_s5 = scalar_lea.vmem %s298_s2, 384  ;;  %p396_p2 = scmp.lt.s32.totalorder %s298_s2, %s298_s2 }
  0x2b   :  { %75 = vadd.xlane.f32.xlu1 %v74_v6  ;;  %69 = vadd.xlane.f32.xlu0 %v68_v7  ;;  %v130_v27 = vsub.s32 4, %v101_v17  ;;  %v137_v29 = vsub.s32 5, %v101_v17  ;;  %v144_v31 = vsub.s32 6, %v101_v17  ;;  %v151_v33 = vsub.s32 7, %v101_v17  ;;  %v173_v6 = vld [vmem:[#allocation5 + $0x8] sm:$0xff]  ;;  %v172_v7 = vld [vmem:[#allocation5] sm:$0xff]  ;;  %p392_p1 = scmp.ne.s32.totalorder %s298_s2, %s391_s5  ;;  %p397_p3 = scmp.lt.s32.totalorder %s391_s5, %s391_s5 }
  0x2c   :  { %v110_v20 = vrot.slane %v98_v19, %v109_v18  ;;  %v117_v24 = vrot.slane %v98_v19, %v116_v21  ;;  %v103_v26 = vrot.slane %v98_v19, %v102_v22  ;;  %v124_v28 = vrot.slane %v98_v19, %v123_v25  ;;  %257 = vst.msk [vmem:[#allocation8 + $0x8] sm:$0xff] %vm255_vm1, %v173_v6 }
  0x2d   :  { %v131_v30 = vrot.slane %v98_v19, %v130_v27  ;;  %v138_v32 = vrot.slane %v98_v19, %v137_v29  ;;  %v145_v34 = vrot.slane %v98_v19, %v144_v31  ;;  %v152_v35 = vrot.slane %v98_v19, %v151_v33  ;;  %256 = vst.msk [vmem:[#allocation8] sm:$0xff] %vm255_vm1, %v172_v7  ;;  %p398_p4 = por %p397_p3, %p396_p2 }
  0x2e   :  { %v472_v37 = vsub.s32 %v207_v36, %v101_v17  ;;  %vm246_vm5 = vcmask 1044484   ;;  %vm248_vm6 = vcmask 1045509   ;;  %vm250_vm7 = vcmask 1046534  }
  0x2f   :  { %81 = vadd.xlane.f32.xlu1 %v80_v10  ;;  %78 = vadd.xlane.f32.xlu0 %v77_v11  ;;  %vm252_vm8 = vcmask 1047559   ;;  %p399_p5 = pnand %p398_p4, %p392_p1 }
  0x33   :  { %87 = vadd.xlane.f32.xlu1 %v86_v14  ;;  %84 = vadd.xlane.f32.xlu0 %v83_v15 }
  0x44   :  { %112 = vbcast.lane.b32.xlu1 %v110_v20, 256 }
  0x48   :  { %119 = vbcast.lane.b32.xlu1 %v117_v24, 256 }
  0x49   :  { %105 = vbcast.lane.b32.xlu0 %v103_v26, 256 }
  0x4c   :  { %126 = vbcast.lane.b32.xlu1 %v124_v28, 256 }
  0x4d   :  { %133 = vbcast.lane.b32.xlu0 %v131_v30, 256 }
  0x50   :  { %140 = vbcast.lane.b32.xlu1 %v138_v32, 256 }
  0x51   :  { %147 = vbcast.lane.b32.xlu0 %v145_v34, 256 }
  0x54   :  { %154 = vbcast.lane.b32.xlu1 %v152_v35, 256 }
  0xb0   :  { %v73_v38 = vpop.xlane.xlu1 %72  ;;  %v67_v39 = vpop.xlane.xlu0 %66 }
  0xb1   :  { %v90_v46 = vmul.f32 0.015625, %v67_v39  ;;  %v92_v52 = vmul.f32 0.015625, %v73_v38 }
  0xb4   :  { %v76_v40 = vpop.xlane.xlu1 %75  ;;  %v70_v41 = vpop.xlane.xlu0 %69 }
  0xb5   :  { %v91_v47 = vmul.f32 0.015625, %v70_v41  ;;  %v93_v56 = vmul.f32 0.015625, %v76_v40 }
  0xb8   :  { %v82_v42 = vpop.xlane.xlu1 %81  ;;  %v79_v43 = vpop.xlane.xlu0 %78 }
  0xb9   :  { %v94_v57 = vmul.f32 0.015625, %v79_v43  ;;  %v95_v62 = vmul.f32 0.015625, %v82_v42 }
  0xbc   :  { %v88_v44 = vpop.xlane.xlu1 %87  ;;  %v85_v45 = vpop.xlane.xlu0 %84 }
  0xbd   :  { %v96_v63 = vmul.f32 0.015625, %v85_v45  ;;  %v97_v3 = vmul.f32 0.015625, %v88_v44 }
  0xc0   :  { %v113_v48 = vpop.permute.xlu1 %112  ;;  %v106_v49 = vpop.permute.xlu0 %105 }
  0xc1   :  { %v165_v50 = vmul.f32 %v113_v48, %v91_v47  ;;  %v164_v51 = vmul.f32 %v106_v49, %v90_v46 }
  0xc3   :  { %186 = vperm.xlu1 %322, %v165_v50   ;;  %183 = vperm.xlu0 %321, %v164_v51  }
  0xc4   :  { %v120_v53 = vpop.permute.xlu1 %119  ;;  %v134_v54 = vpop.permute.xlu0 %133 }
  0xc5   :  { %v166_v55 = vmul.f32 %v120_v53, %v92_v52  ;;  %v168_v59 = vmul.f32 %v134_v54, %v94_v57 }
  0xc7   :  { %189 = vperm.xlu1 %322, %v166_v55  }
  0xc8   :  { %v127_v58 = vpop.permute.xlu1 %126  ;;  %v148_v61 = vpop.permute.xlu0 %147 }
  0xc9   :  { %v167_v60 = vmul.f32 %v127_v58, %v93_v56  ;;  %v170_v1 = vmul.f32 %v148_v61, %v96_v63 }
  0xcb   :  { %192 = vperm.xlu0 %321, %v167_v60   ;;  %195 = vperm.xlu1 %322, %v168_v59  }
  0xcc   :  { %v141_v0 = vpop.permute.xlu1 %140 }
  0xcd   :  { %v169_v2 = vmul.f32 %v141_v0, %v95_v62 }
  0xcf   :  { %198 = vperm.xlu0 %321, %v169_v2   ;;  %201 = vperm.xlu1 %322, %v170_v1  }
  0xd0   :  { %v155_v4 = vpop.permute.xlu1 %154 }
  0xd1   :  { %v171_v5 = vmul.f32 %v155_v4, %v97_v3 }
  0xd3   :  { %204 = vperm.xlu0 %321, %v171_v5  }
 0x13e   :  { %v187_v8 = vpop.permute.xlu1 %186  ;;  %v184_v9 = vpop.permute.xlu0 %183 }
 0x13f   :  { %v215_v11 = vrot.slane %v187_v8, %v472_v37  ;;  %v211_v12 = vrot.slane %v184_v9, %v472_v37 }
 0x141   :  { %v241_v16 = vsel %vm240_vm2, %v215_v11, %v211_v12 }
 0x142   :  { %v190_v10 = vpop.permute.xlu1 %189 }
 0x143   :  { %v219_v13 = vrot.slane %v190_v10, %v472_v37 }
 0x145   :  { %v243_v18 = vsel %vm242_vm3, %v219_v13, %v241_v16 }
 0x146   :  { %v196_v14 = vpop.permute.xlu1 %195  ;;  %v193_v15 = vpop.permute.xlu0 %192 }
 0x147   :  { %v223_v17 = vrot.slane %v193_v15, %v472_v37  ;;  %v227_v19 = vrot.slane %v196_v14, %v472_v37 }
 0x149   :  { %v245_v20 = vsel %vm244_vm4, %v223_v17, %v243_v18 }
 0x14a   :  { %v202_v21 = vpop.permute.xlu1 %201  ;;  %v199_v22 = vpop.permute.xlu0 %198  ;;  %v247_v25 = vsel %vm246_vm5, %v227_v19, %v245_v20 }
 0x14b   :  { %v231_v23 = vrot.slane %v199_v22, %v472_v37  ;;  %v235_v24 = vrot.slane %v202_v21, %v472_v37 }
 0x14d   :  { %v249_v26 = vsel %vm248_vm6, %v231_v23, %v247_v25 }
 0x14e   :  { %v205_v27 = vpop.permute.xlu0 %204  ;;  %v251_v29 = vsel %vm250_vm7, %v235_v24, %v249_v26 }
 0x14f   :  { %v239_v28 = vrot.slane %v205_v27, %v472_v37 }
 0x151   :  { %v253_v30 = vsel %vm252_vm8, %v239_v28, %v251_v29 }
 0x152   :  { %v260_v31 = vmul.f32 %v253_v30, %v173_v6  ;;  %258 = vst.msk [vmem:[#allocation8 + $0x10] sm:$0xff] %vm255_vm1, %v253_v30  ;;  %v259_v32 = vmul.f32 %v253_v30, %v172_v7  ;;  %v261_v35 = vmul.f32 %v253_v30, %v253_v30 }
 0x154   :  { %v265_v33 = vsel %vm255_vm1, %v260_v31, 0.0  ;;  %v262_v34 = vsel %vm255_vm1, %v259_v32, 0.0  ;;  %v268_v36 = vsel %vm255_vm1, %v261_v35, 0.0 }
 0x155   :  { %266 = vadd.xlane.f32.xlu0 %v265_v33  ;;  %263 = vadd.xlane.f32.xlu1 %v262_v34 }
 0x159   :  { %269 = vadd.xlane.f32.xlu0 %v268_v36 }
 0x15a   :  { %402 = shalt.err (!%p399_p5)
}
 0x15b   :  { %303 = dma.vmem_to_hbm [thread:$0]  %s298_s2, 384, %s506_s3, [#allocation4], %s419_s20, %s419_s20, %s420_s21   ;;  %vm288_vm9 = vcmask 7168  }
 0x1de   :  { %v267_v37 = vpop.xlane.xlu0 %266  ;;  %v264_v38 = vpop.xlane.xlu1 %263 }
 0x1df   :  { %v271_v39 = vmax.f32 %v264_v38, %v267_v37 }
 0x1e2   :  { %v270_v40 = vpop.xlane.xlu0 %269 }
 0x1e3   :  { %v272_v41 = vmax.f32 %v271_v39, %v270_v40 }
 0x1e5   :  { %v273_v42 = vsub.f32 %v264_v38, %v272_v41  ;;  %v274_v43 = vsub.f32 %v267_v37, %v272_v41  ;;  %v275_v44 = vsub.f32 %v270_v40, %v272_v41 }
 0x1e7   :  { %v276_v45 = vmul.f32 1.442695, %v273_v42  ;;  %v278_v46 = vmul.f32 1.442695, %v274_v43  ;;  %v280_v47 = vmul.f32 1.442695, %v275_v44 }
 0x1e9   :  { %323 = vpow2.f32 %v276_v45 }
 0x1ea   :  { %325 = vpow2.f32 %v278_v46 }
 0x1eb   :  { %327 = vpow2.f32 %v280_v47 }
 0x1f6   :  { %v324_v48 = vpop.eup %323 }
 0x1f7   :  { %v326_v49 = vpop.eup %325 }
 0x1f8   :  { %v282_v50 = vadd.f32 %v326_v49, %v324_v48  ;;  %v328_v51 = vpop.eup %327 }
 0x1fa   :  { %v283_v52 = vadd.f32 %v328_v51, %v282_v50 }
 0x1fc   :  { %329 = vrcp.f32 %v283_v52 }
 0x209   :  { %v330_v53 = vpop.eup %329 }
 0x20a   :  { %v285_v54 = vmul.f32 %v330_v53, %v324_v48  ;;  %v286_v55 = vmul.f32 %v330_v53, %v326_v49  ;;  %v287_v56 = vmul.f32 %v330_v53, %v328_v51 }
 0x20c   :  { %289 = vst.msk [vmem:[%s507_s4] sm:$0xff] %vm288_vm9, %v285_v54  ;;  %290 = vst.msk [vmem:[%s507_s4 + $0x8] sm:$0xff] %vm288_vm9, %v286_v55 }
 0x20d   :  { %291 = vst.msk [vmem:[%s507_s4 + $0x10] sm:$0xff] %vm288_vm9, %v287_v56 }
 0x20e   :  { %415 = dma.done.wait [#allocation4], 384  }
 0x20f   :  { %416 = vsyncadd [#allocation4], 4294966912 }
 0x210   :  { %311 = vsyncpa [#allocation3], 1 }
 0x211   :  { %312 = vsyncpa [#allocation6], 1 }
 0x212   :  { %313 = vsyncpa [#allocation4], 1 }

</bundles_post_ra>
